<compile_context>
chip_gen: v5e
topology: v5e:2x2
jax: 0.10.0
libtpu: 0.0.40
codegen_flags: <defaults>
</compile_context>

<pallas_src>
import functools

import jax
import jax.numpy as jnp
from jax.experimental import pallas as pl
from jax.experimental.pallas import tpu as pltpu


def _round_up(x, m):
    return (x + m - 1) // m * m


# ----------------------------- Pallas kernel ---------------------------------

def _resblock_kernel(x_ref, mask_ref, w0_ref, b0_ref, wfg_ref, bfg_ref,
                     wc_ref, bc_ref, out_ref, h3_ref, *,
                     num_rates, c_pad, c_out, out_off, out_w):
    """One block per grid step.

    x_ref   : (1, 1, C_in, W_in)     compute dtype (bf16 by default)
    mask_ref: (1, 2R, 1, W_in)       f32 multiplicative tap masks
    w0_ref  : (C_pad, C_in)          b0_ref : (C_pad, 1)
    wfg_ref : (R, 2*C_pad, 3*C_pad)  bfg_ref: (R, 2*C_pad, 1)
    wc_ref  : (R, C_pad, C_pad)      bc_ref : (R, C_pad, 1)
    out_ref : (1, 1, C_out, W_out)   f32
    h3_ref  : (3*C_pad, W_in)        compute-dtype VMEM scratch (tap stack)
    """
    x = x_ref[0, 0]
    w_in = x.shape[-1]

    # conv[0]: 1x1 conv == channel matmul (f32 accumulation on the MXU).
    h = (jnp.dot(w0_ref[...], x, preferred_element_type=jnp.float32)
         + b0_ref[...])
    res = h

    masks = mask_ref[0]                                   # (2R, 1, W_in)

    # num_rates is a small static constant -> keep the unroll (LLO visibility).
    # TODO(synk): at production C*W, switch to lax.fori_loop with dynamic
    # wfg_ref[i]/wc_ref[i] indexing if the bundle shows spills.
    for i in range(num_rates):
        d = 2 ** i
        # Same-length dilated conv (k=3, padding=d, dilation=d):
        #   y[:, t] = W_l @ h[:, t-d] + W_c @ h[:, t] + W_r @ h[:, t+d]
        # Taps via XLU rolls; the precomputed masks zero invalid taps
        # (sequence edges, packed-segment boundaries, lane padding) with one
        # vmul each -- no in-kernel iota/mod/select.
        left = pltpu.roll(h, shift=d % w_in, axis=1) * masks[2 * i]
        right = pltpu.roll(h, shift=(w_in - d) % w_in, axis=1) * masks[2 * i + 1]

        # Stack taps into the persistent scratch (c_pad is a multiple of the
        # compute dtype's sublane tile, so the offsets are aligned) -- no
        # per-rate concatenate / fresh (3C, W) buffer.
        h3_ref[0:c_pad, :] = left.astype(h3_ref.dtype)
        h3_ref[c_pad:2 * c_pad, :] = h.astype(h3_ref.dtype)
        h3_ref[2 * c_pad:, :] = right.astype(h3_ref.dtype)

        # One fused MXU matmul yields filter AND gate pre-activations.
        fg = (jnp.dot(wfg_ref[i], h3_ref[...],
                      preferred_element_type=jnp.float32) + bfg_ref[i])
        filt = jnp.tanh(fg[:c_pad])
        gate = 0.5 * (1.0 + jnp.tanh(0.5 * fg[c_pad:]))    # sigmoid, 1 EUP op
        gated = filt * gate

        # 1x1 conv after the gated unit; accumulate into the residual.
        h = (jnp.dot(wc_ref[i], gated.astype(wc_ref.dtype),
                     preferred_element_type=jnp.float32) + bc_ref[i])
        res = res + h

    out_ref[0, 0] = res[:c_out, out_off:out_off + out_w].astype(out_ref.dtype)


# ------------------------------- Wrapper --------------------------------------

def _pick_block_width(c_pad, compute_bytes, budget_bytes=20 * 2 ** 20):
    # ~8 live (c_pad, W) f32 activations + the (3*c_pad, W) tap scratch must
    # stay well under the scoped-VMEM budget (sized for v7x's 64 MiB VMEM).
    per_lane = c_pad * (8 * 4 + 3 * compute_bytes)
    w = budget_bytes // per_lane
    return int(max(128, min(2048, (w // 128) * 128)))


def resblock_wavenet_pallas(x, params, *, num_rates,
                            compute_dtype=jnp.bfloat16, block_lanes=None):
    """x: (N, C_in, L) f32 -> (N, C_out, L) f32.

    params = (w0, b0, wf, bf, wg, bg, wc, bc):
      w0: (C_out, C_in)              b0: (C_out, 1)
      wf, wg: (R, 3, C_out, C_out)   bf, bg: (R, C_out, 1)   (tap-major)
      wc: (R, C_out, C_out)          bc: (R, C_out, 1)
    PyTorch Conv1d weights (out, in, k) map to (k, out, in) per rate via
    w.transpose(2, 0, 1).

    compute_dtype: bf16 by default (MXU-native on v5e/v6e/v7x, halves x DMA);
    pass jnp.float32 for bit-tight validation.
    block_lanes: override the auto (VMEM-budgeted) lane width per grid block.
    """
    w0, b0, wf, bf, wg, bg, wc, bc = params
    n, c_in, length = x.shape
    c_out = w0.shape[0]
    cdt = jnp.dtype(compute_dtype)

    # Pad channels to the compute dtype's sublane tile so the filter/gate
    # split and the 3-tap stacking offsets stay tile-aligned.
    ch_tile = 8 * (4 // cdt.itemsize)
    c_pad = _round_up(c_out, ch_tile)
    pc = c_pad - c_out

    halo = (1 << num_rates) - 1            # cumulative receptive field / side
    width_cap = (block_lanes if block_lanes is not None
                 else _pick_block_width(c_pad, cdt.itemsize))
    width_cap = max(128, (width_cap // 128) * 128)

    packed = _round_up(length, 128) <= width_cap

    if packed:
        # ---- packed-batch mode: several batch elems share one lane block ----
        bpb = min(n, max(1, width_cap // length))
        g0 = pl.cdiv(n, bpb)
        # Give v7x's two TensorCores separate grid steps when there is enough
        # work to split (no effect on single-TC v5e/v6e).
        if g0 == 1 and n > 1 and (n // 2) * length >= 512:
            bpb = pl.cdiv(n, 2)
            g0 = pl.cdiv(n, bpb)
        g1 = 1
        w_in = _round_up(bpb * length, 128)
        w_out, out_off = w_in, 0

        n_pad = g0 * bpb
        xt = jnp.pad(x, ((0, n_pad - n), (0, 0), (0, 0)))
        xt = (xt.reshape(g0, bpb, c_in, length).transpose(0, 2, 1, 3)
                .reshape(g0, c_in, bpb * length))
        xt = jnp.pad(xt, ((0, 0), (0, 0), (0, w_in - bpb * length)))
        x_tiles = xt[:, None].astype(compute_dtype)      # (g0, 1, c_in, w_in)
        # (When bpb == 1 and L % 128 == 0 the pads/transposes above are
        #  no-ops, so no extra HBM round trip is emitted for x.)

        lane = jnp.arange(w_in)
        in_data = lane < bpb * length
        pos = lane % length                              # pos inside segment
        mrows = []
        for i in range(num_rates):
            d = 2 ** i
            mrows.append(in_data & (pos >= d))           # left tap valid
            mrows.append(in_data & (pos < length - d))   # right tap valid
        masks = jnp.stack(mrows).astype(jnp.float32)     # (2R, w_in)
        masks = masks[None, :, None, :]                  # (1, 2R, 1, w_in)
    else:
        # ---- L-tiled mode: tile time with a cumulative-RF halo per side ----
        tl = width_cap
        g0, g1 = n, pl.cdiv(length, tl)
        w_in = _round_up(tl + 2 * halo, 128)
        w_out, out_off = tl, halo

        pad_r = (g1 - 1) * tl - halo + w_in - length
        x_pad = jnp.pad(x, ((0, 0), (0, 0), (halo, pad_r)))
        win = (jnp.arange(g1) * tl)[:, None] + jnp.arange(w_in)[None, :]
        x_tiles = x_pad[:, :, win]                       # (n, c_in, g1, w_in)
        x_tiles = x_tiles.transpose(0, 2, 1, 3).astype(compute_dtype)
        # TODO(synk): for very large inputs replace this HBM pre-gather of x
        # with a manual haloed DMA (memory_space=pl.ANY + make_async_copy).

        abs_pos = (jnp.arange(g1) * tl)[:, None] - halo + jnp.arange(w_in)
        mrows = []
        for i in range(num_rates):
            d = 2 ** i
            mrows.append((abs_pos >= d) & (abs_pos < length))
            mrows.append((abs_pos >= 0) & (abs_pos < length - d))
        masks = jnp.stack(mrows, axis=1).astype(jnp.float32)  # (g1, 2R, w_in)
        masks = masks[:, :, None, :]                          # (g1, 2R, 1, w_in)

    # ---- weights: pad channels, fuse filter+gate into one matmul per rate ----
    w0_p = jnp.pad(w0, ((0, pc), (0, 0))).astype(compute_dtype)
    b0_p = jnp.pad(b0, ((0, pc), (0, 0)))
    wf_p = jnp.pad(wf, ((0, 0), (0, 0), (0, pc), (0, pc)))
    wg_p = jnp.pad(wg, ((0, 0), (0, 0), (0, pc), (0, pc)))
    wf_s = wf_p.transpose(0, 2, 1, 3).reshape(num_rates, c_pad, 3 * c_pad)
    wg_s = wg_p.transpose(0, 2, 1, 3).reshape(num_rates, c_pad, 3 * c_pad)
    wfg = jnp.concatenate([wf_s, wg_s], axis=1).astype(compute_dtype)
    bfg = jnp.concatenate([jnp.pad(bf, ((0, 0), (0, pc), (0, 0))),
                           jnp.pad(bg, ((0, 0), (0, pc), (0, 0)))], axis=1)
    wc_p = jnp.pad(wc, ((0, 0), (0, pc), (0, pc))).astype(compute_dtype)
    bc_p = jnp.pad(bc, ((0, 0), (0, pc), (0, 0)))

    kernel = functools.partial(_resblock_kernel, num_rates=num_rates,
                               c_pad=c_pad, c_out=c_out,
                               out_off=out_off, out_w=w_out)

    def full_spec(shape):
        nd = len(shape)

        def idx(*_):
            return (0,) * nd

        return pl.BlockSpec(shape, idx)

    out_packed = pl.pallas_call(
        kernel,
        out_shape=jax.ShapeDtypeStruct((g0, g1, c_out, w_out), jnp.float32),
        grid_spec=pltpu.PrefetchScalarGridSpec(
            num_scalar_prefetch=0,
            grid=(g0, g1),
            in_specs=[
                pl.BlockSpec((1, 1, c_in, w_in), lambda a, b: (a, b, 0, 0)),
                pl.BlockSpec((1, 2 * num_rates, 1, w_in),
                             lambda a, b: (b, 0, 0, 0)),
                full_spec(w0_p.shape), full_spec(b0_p.shape),
                full_spec(wfg.shape), full_spec(bfg.shape),
                full_spec(wc_p.shape), full_spec(bc_p.shape),
            ],
            out_specs=pl.BlockSpec((1, 1, c_out, w_out),
                                   lambda a, b: (a, b, 0, 0)),
            scratch_shapes=[pltpu.VMEM((3 * c_pad, w_in), compute_dtype)],
        ),
        compiler_params=pltpu.CompilerParams(
            dimension_semantics=("parallel", "parallel"),
            # > 32 MiB default, still under v7x's 64 MiB physical VMEM; block
            # width above is budgeted (~20 MiB live activations) so this
            # leaves headroom for double-buffered DMAs on every generation.
            vmem_limit_bytes=48 * 1024 * 1024),
    )(x_tiles, masks, w0_p, b0_p, wfg, bfg, wc_p, bc_p)

    # ------------------------------- unpack -----------------------------------
    if packed:
        out = out_packed[:, 0, :, :bpb * length]
        out = (out.reshape(g0, c_out, bpb, length).transpose(0, 2, 1, 3)
                  .reshape(g0 * bpb, c_out, length))
        return out[:n]
    out = out_packed.transpose(0, 2, 1, 3).reshape(n, c_out, g1 * w_out)
    return out[:, :, :length]


# --------------------------- Pure-JAX reference --------------------------------

def resblock_wavenet_ref(x, params, *, num_rates):
    w0, b0, wf, bf, wg, bg, wc, bc = params
    n, _, length = x.shape
    hp = "highest"
    h = jnp.einsum('oc,ncl->nol', w0, x, precision=hp) + b0[None]
    res = h

    def dil(w_taps, bias, h_cur, d):
        z = jnp.zeros((n, h_cur.shape[1], d), h_cur.dtype)
        left = jnp.concatenate([z, h_cur], axis=2)[:, :, :length]
        right = jnp.concatenate([h_cur, z], axis=2)[:, :, d:d + length]
        return (jnp.einsum('oc,ncl->nol', w_taps[0], left, precision=hp)
                + jnp.einsum('oc,ncl->nol', w_taps[1], h_cur, precision=hp)
                + jnp.einsum('oc,ncl->nol', w_taps[2], right, precision=hp)
                + bias[None])

    for i in range(num_rates):
        d = 2 ** i
        f = jnp.tanh(dil(wf[i], bf[i], h, d))
        g = jax.nn.sigmoid(dil(wg[i], bg[i], h, d))
        h = jnp.einsum('oc,ncl->nol', wc[i], f * g, precision=hp) + bc[i][None]
        res = res + h
    return res


# --------------------------------- Main ----------------------------------------

def _init_params(key, c_in, c_out, num_rates, kernel_size=3):
    ks = jax.random.split(key, 8)

    def u(k, shape, fan_in):
        b = 1.0 / jnp.sqrt(fan_in)
        return jax.random.uniform(k, shape, jnp.float32, -b, b)

    w0 = u(ks[0], (c_out, c_in), c_in)
    b0 = u(ks[1], (c_out, 1), c_in)
    wf = u(ks[2], (num_rates, kernel_size, c_out, c_out), c_out * kernel_size)
    bf = u(ks[3], (num_rates, c_out, 1), c_out * kernel_size)
    wg = u(ks[4], (num_rates, kernel_size, c_out, c_out), c_out * kernel_size)
    bg = u(ks[5], (num_rates, c_out, 1), c_out * kernel_size)
    wc = u(ks[6], (num_rates, c_out, c_out), c_out)
    bc = u(ks[7], (num_rates, c_out, 1), c_out)
    return (w0, b0, wf, bf, wg, bg, wc, bc)


if __name__ == "__main__":
    key = jax.random.PRNGKey(0)
    kp, kx, kp2, kx2 = jax.random.split(key, 4)

    # ---- small config (packed-batch path), matches the PyTorch module -------
    in_c, out_c, rates, batch, length = 4, 8, 3, 2, 16
    params = _init_params(kp, in_c, out_c, rates)
    x = jax.random.normal(kx, (batch, in_c, length), jnp.float32)
    ref = resblock_wavenet_ref(x, params, num_rates=rates)

    # f32 compute path: tight validation of the algorithm.
    out_f32 = jax.block_until_ready(
        resblock_wavenet_pallas(x, params, num_rates=rates,
                                compute_dtype=jnp.float32))
    assert out_f32.shape == (batch, out_c, length)
    assert jnp.allclose(out_f32, ref, atol=1e-4, rtol=1e-4), "f32 mismatch"

    # Default bf16 MXU path: loose tolerance (bf16 operand rounding).
    out_bf16 = jax.block_until_ready(
        resblock_wavenet_pallas(x, params, num_rates=rates))
    assert jnp.allclose(out_bf16, ref, atol=1e-1, rtol=1e-1), "bf16 mismatch"

    # ---- L-tiled path (cumulative-receptive-field halo), forced small tiles --
    rates2, length2 = 4, 700
    params2 = _init_params(kp2, in_c, out_c, rates2)
    x2 = jax.random.normal(kx2, (batch, in_c, length2), jnp.float32)
    ref2 = resblock_wavenet_ref(x2, params2, num_rates=rates2)
    out2 = jax.block_until_ready(
        resblock_wavenet_pallas(x2, params2, num_rates=rates2,
                                compute_dtype=jnp.float32, block_lanes=256))
    assert out2.shape == (batch, out_c, length2)
    assert jnp.allclose(out2, ref2, atol=1e-4, rtol=1e-4), "tiled mismatch"

    print("KERNEL_OK")
</pallas_src>

<mosaic_0001>
module attributes {stable_mosaic.version = 11 : i64} {
  func.func @_resblock_kernel(%arg0: i32, %arg1: i32, %arg2: memref<1x1x4x128xf32, #tpu.memory_space<vmem>>, %arg3: memref<1x6x1x128xf32, #tpu.memory_space<vmem>>, %arg4: memref<8x4xf32, #tpu.memory_space<vmem>>, %arg5: memref<8x1xf32, #tpu.memory_space<vmem>>, %arg6: memref<3x16x24xf32, #tpu.memory_space<vmem>>, %arg7: memref<3x16x1xf32, #tpu.memory_space<vmem>>, %arg8: memref<3x8x8xf32, #tpu.memory_space<vmem>>, %arg9: memref<3x8x1xf32, #tpu.memory_space<vmem>>, %arg10: memref<1x1x8x128xf32, #tpu.memory_space<vmem>>, %arg11: memref<24x128xf32, #tpu.memory_space<vmem>>) attributes {dimension_semantics = [#tpu.dimension_semantics<parallel>, #tpu.dimension_semantics<parallel>], iteration_bounds = array<i64: 1, 1>, scalar_prefetch = 0 : i64, scratch_operands = 1 : i64, tpu.core_type = #tpu.core_type<tc>, window_params = [{transform_indices = @transform_0, window_bounds = array<i64: 1, 1, 4, 128>}, {transform_indices = @transform_1, window_bounds = array<i64: 1, 6, 1, 128>}, {pipeline_mode = #tpu.pipeline_mode<synchronous>, transform_indices = @transform_2, window_bounds = array<i64: 8, 4>}, {pipeline_mode = #tpu.pipeline_mode<synchronous>, transform_indices = @transform_3, window_bounds = array<i64: 8, 1>}, {pipeline_mode = #tpu.pipeline_mode<synchronous>, transform_indices = @transform_4, window_bounds = array<i64: 3, 16, 24>}, {pipeline_mode = #tpu.pipeline_mode<synchronous>, transform_indices = @transform_5, window_bounds = array<i64: 3, 16, 1>}, {pipeline_mode = #tpu.pipeline_mode<synchronous>, transform_indices = @transform_6, window_bounds = array<i64: 3, 8, 8>}, {pipeline_mode = #tpu.pipeline_mode<synchronous>, transform_indices = @transform_7, window_bounds = array<i64: 3, 8, 1>}, {transform_indices = @transform_8, window_bounds = array<i64: 1, 1, 8, 128>}]} {
    %c0 = arith.constant 0 : index
    %c0_0 = arith.constant 0 : index
    %c0_1 = arith.constant 0 : index
    %c0_2 = arith.constant 0 : index
    %0 = vector.load %arg2[%c0, %c0_0, %c0_1, %c0_2] : memref<1x1x4x128xf32, #tpu.memory_space<vmem>>, vector<1x1x4x128xf32>
    %1 = vector.shape_cast %0 : vector<1x1x4x128xf32> to vector<4x128xf32>
    %c0_3 = arith.constant 0 : index
    %c0_4 = arith.constant 0 : index
    %2 = vector.load %arg4[%c0_3, %c0_4] : memref<8x4xf32, #tpu.memory_space<vmem>>, vector<8x4xf32>
    %cst = arith.constant dense<0.000000e+00> : vector<8x128xf32>
    %3 = tpu.matmul %2, %1, %cst {dimension_numbers = #tpu.dot_dimension_numbers<[1], [0], [0], [1], [0, 0, 1, 1], [], []>} : vector<8x4xf32>, vector<4x128xf32>, vector<8x128xf32> -> vector<8x128xf32>
    %c0_5 = arith.constant 0 : index
    %c0_6 = arith.constant 0 : index
    %4 = vector.load %arg5[%c0_5, %c0_6] : memref<8x1xf32, #tpu.memory_space<vmem>>, vector<8x1xf32>
    %5 = vector.broadcast %4 : vector<8x1xf32> to vector<8x128xf32>
    %6 = arith.addf %3, %5 : vector<8x128xf32>
    %c0_7 = arith.constant 0 : index
    %c0_8 = arith.constant 0 : index
    %c0_9 = arith.constant 0 : index
    %c0_10 = arith.constant 0 : index
    %7 = vector.load %arg3[%c0_7, %c0_8, %c0_9, %c0_10] : memref<1x6x1x128xf32, #tpu.memory_space<vmem>>, vector<1x6x1x128xf32>
    %8 = vector.shape_cast %7 : vector<1x6x1x128xf32> to vector<6x1x128xf32>
    %c1_i32 = arith.constant 1 : i32
    %9 = tpu.dynamic_rotate %6 by %c1_i32 dim 1 : vector<8x128xf32>, i32 -> vector<8x128xf32>
    %10 = vector.extract_strided_slice %8 {offsets = [0, 0, 0], sizes = [1, 1, 128], strides = [1, 1, 1]} : vector<6x1x128xf32> to vector<1x1x128xf32>
    %11 = vector.shape_cast %10 : vector<1x1x128xf32> to vector<1x128xf32>
    %12 = vector.broadcast %11 : vector<1x128xf32> to vector<8x128xf32>
    %13 = arith.mulf %9, %12 : vector<8x128xf32>
    %c127_i32 = arith.constant 127 : i32
    %14 = tpu.dynamic_rotate %6 by %c127_i32 dim 1 : vector<8x128xf32>, i32 -> vector<8x128xf32>
    %15 = vector.extract_strided_slice %8 {offsets = [1, 0, 0], sizes = [1, 1, 128], strides = [1, 1, 1]} : vector<6x1x128xf32> to vector<1x1x128xf32>
    %16 = vector.shape_cast %15 : vector<1x1x128xf32> to vector<1x128xf32>
    %17 = vector.broadcast %16 : vector<1x128xf32> to vector<8x128xf32>
    %18 = arith.mulf %14, %17 : vector<8x128xf32>
    %c0_11 = arith.constant 0 : index
    %c0_12 = arith.constant 0 : index
    %19 = vector.load %arg11[%c0_11, %c0_12] : memref<24x128xf32, #tpu.memory_space<vmem>>, vector<8x128xf32>
    tpu.vector_store %arg11[%c0_11, %c0_12], %13 {strides = array<i32>} : memref<24x128xf32, #tpu.memory_space<vmem>>, vector<8x128xf32>,
    %c8 = arith.constant 8 : index
    %c0_13 = arith.constant 0 : index
    %20 = vector.load %arg11[%c8, %c0_13] : memref<24x128xf32, #tpu.memory_space<vmem>>, vector<8x128xf32>
    tpu.vector_store %arg11[%c8, %c0_13], %6 {strides = array<i32>} : memref<24x128xf32, #tpu.memory_space<vmem>>, vector<8x128xf32>,
    %c16 = arith.constant 16 : index
    %c0_14 = arith.constant 0 : index
    %21 = vector.load %arg11[%c16, %c0_14] : memref<24x128xf32, #tpu.memory_space<vmem>>, vector<8x128xf32>
    tpu.vector_store %arg11[%c16, %c0_14], %18 {strides = array<i32>} : memref<24x128xf32, #tpu.memory_space<vmem>>, vector<8x128xf32>,
    %c0_15 = arith.constant 0 : index
    %c0_16 = arith.constant 0 : index
    %c0_17 = arith.constant 0 : index
    %22 = vector.load %arg6[%c0_15, %c0_16, %c0_17] : memref<3x16x24xf32, #tpu.memory_space<vmem>>, vector<1x16x24xf32>
    %23 = vector.shape_cast %22 : vector<1x16x24xf32> to vector<16x24xf32>
    %c0_18 = arith.constant 0 : index
    %c0_19 = arith.constant 0 : index
    %24 = vector.load %arg11[%c0_18, %c0_19] : memref<24x128xf32, #tpu.memory_space<vmem>>, vector<24x128xf32>
    %cst_20 = arith.constant dense<0.000000e+00> : vector<16x128xf32>
    %25 = tpu.matmul %23, %24, %cst_20 {dimension_numbers = #tpu.dot_dimension_numbers<[1], [0], [0], [1], [0, 0, 1, 1], [], []>} : vector<16x24xf32>, vector<24x128xf32>, vector<16x128xf32> -> vector<16x128xf32>
    %c0_21 = arith.constant 0 : index
    %c0_22 = arith.constant 0 : index
    %c0_23 = arith.constant 0 : index
    %26 = vector.load %arg7[%c0_21, %c0_22, %c0_23] : memref<3x16x1xf32, #tpu.memory_space<vmem>>, vector<1x16x1xf32>
    %27 = vector.shape_cast %26 : vector<1x16x1xf32> to vector<16x1xf32>
    %28 = vector.broadcast %27 : vector<16x1xf32> to vector<16x128xf32>
    %29 = arith.addf %25, %28 : vector<16x128xf32>
    %30 = vector.extract_strided_slice %29 {offsets = [0, 0], sizes = [8, 128], strides = [1, 1]} : vector<16x128xf32> to vector<8x128xf32>
    %31 = math.tanh %30 : vector<8x128xf32>
    %32 = vector.extract_strided_slice %29 {offsets = [8, 0], sizes = [8, 128], strides = [1, 1]} : vector<16x128xf32> to vector<8x128xf32>
    %cst_24 = arith.constant 5.000000e-01 : f32
    %33 = vector.broadcast %cst_24 : f32 to vector<8x128xf32>
    %34 = arith.mulf %33, %32 : vector<8x128xf32>
    %35 = math.tanh %34 : vector<8x128xf32>
    %cst_25 = arith.constant 1.000000e+00 : f32
    %36 = vector.broadcast %cst_25 : f32 to vector<8x128xf32>
    %37 = arith.addf %36, %35 : vector<8x128xf32>
    %cst_26 = arith.constant 5.000000e-01 : f32
    %38 = vector.broadcast %cst_26 : f32 to vector<8x128xf32>
    %39 = arith.mulf %38, %37 : vector<8x128xf32>
    %40 = arith.mulf %31, %39 : vector<8x128xf32>
    %c0_27 = arith.constant 0 : index
    %c0_28 = arith.constant 0 : index
    %c0_29 = arith.constant 0 : index
    %41 = vector.load %arg8[%c0_27, %c0_28, %c0_29] : memref<3x8x8xf32, #tpu.memory_space<vmem>>, vector<1x8x8xf32>
    %42 = vector.shape_cast %41 : vector<1x8x8xf32> to vector<8x8xf32>
    %cst_30 = arith.constant dense<0.000000e+00> : vector<8x128xf32>
    %43 = tpu.matmul %42, %40, %cst_30 {dimension_numbers = #tpu.dot_dimension_numbers<[1], [0], [0], [1], [0, 0, 1, 1], [], []>} : vector<8x8xf32>, vector<8x128xf32>, vector<8x128xf32> -> vector<8x128xf32>
    %c0_31 = arith.constant 0 : index
    %c0_32 = arith.constant 0 : index
    %c0_33 = arith.constant 0 : index
    %44 = vector.load %arg9[%c0_31, %c0_32, %c0_33] : memref<3x8x1xf32, #tpu.memory_space<vmem>>, vector<1x8x1xf32>
    %45 = vector.shape_cast %44 : vector<1x8x1xf32> to vector<8x1xf32>
    %46 = vector.broadcast %45 : vector<8x1xf32> to vector<8x128xf32>
    %47 = arith.addf %43, %46 : vector<8x128xf32>
    %48 = arith.addf %6, %47 : vector<8x128xf32>
    %c2_i32 = arith.constant 2 : i32
    %49 = tpu.dynamic_rotate %47 by %c2_i32 dim 1 : vector<8x128xf32>, i32 -> vector<8x128xf32>
    %50 = vector.extract_strided_slice %8 {offsets = [2, 0, 0], sizes = [1, 1, 128], strides = [1, 1, 1]} : vector<6x1x128xf32> to vector<1x1x128xf32>
    %51 = vector.shape_cast %50 : vector<1x1x128xf32> to vector<1x128xf32>
    %52 = vector.broadcast %51 : vector<1x128xf32> to vector<8x128xf32>
    %53 = arith.mulf %49, %52 : vector<8x128xf32>
    %c126_i32 = arith.constant 126 : i32
    %54 = tpu.dynamic_rotate %47 by %c126_i32 dim 1 : vector<8x128xf32>, i32 -> vector<8x128xf32>
    %55 = vector.extract_strided_slice %8 {offsets = [3, 0, 0], sizes = [1, 1, 128], strides = [1, 1, 1]} : vector<6x1x128xf32> to vector<1x1x128xf32>
    %56 = vector.shape_cast %55 : vector<1x1x128xf32> to vector<1x128xf32>
    %57 = vector.broadcast %56 : vector<1x128xf32> to vector<8x128xf32>
    %58 = arith.mulf %54, %57 : vector<8x128xf32>
    %c0_34 = arith.constant 0 : index
    %c0_35 = arith.constant 0 : index
    %59 = vector.load %arg11[%c0_34, %c0_35] : memref<24x128xf32, #tpu.memory_space<vmem>>, vector<8x128xf32>
    tpu.vector_store %arg11[%c0_34, %c0_35], %53 {strides = array<i32>} : memref<24x128xf32, #tpu.memory_space<vmem>>, vector<8x128xf32>,
    %c8_36 = arith.constant 8 : index
    %c0_37 = arith.constant 0 : index
    %60 = vector.load %arg11[%c8_36, %c0_37] : memref<24x128xf32, #tpu.memory_space<vmem>>, vector<8x128xf32>
    tpu.vector_store %arg11[%c8_36, %c0_37], %47 {strides = array<i32>} : memref<24x128xf32, #tpu.memory_space<vmem>>, vector<8x128xf32>,
    %c16_38 = arith.constant 16 : index
    %c0_39 = arith.constant 0 : index
    %61 = vector.load %arg11[%c16_38, %c0_39] : memref<24x128xf32, #tpu.memory_space<vmem>>, vector<8x128xf32>
    tpu.vector_store %arg11[%c16_38, %c0_39], %58 {strides = array<i32>} : memref<24x128xf32, #tpu.memory_space<vmem>>, vector<8x128xf32>,
    %c1 = arith.constant 1 : index
    %c0_40 = arith.constant 0 : index
    %c0_41 = arith.constant 0 : index
    %62 = vector.load %arg6[%c1, %c0_40, %c0_41] : memref<3x16x24xf32, #tpu.memory_space<vmem>>, vector<1x16x24xf32>
    %63 = vector.shape_cast %62 : vector<1x16x24xf32> to vector<16x24xf32>
    %c0_42 = arith.constant 0 : index
    %c0_43 = arith.constant 0 : index
    %64 = vector.load %arg11[%c0_42, %c0_43] : memref<24x128xf32, #tpu.memory_space<vmem>>, vector<24x128xf32>
    %cst_44 = arith.constant dense<0.000000e+00> : vector<16x128xf32>
    %65 = tpu.matmul %63, %64, %cst_44 {dimension_numbers = #tpu.dot_dimension_numbers<[1], [0], [0], [1], [0, 0, 1, 1], [], []>} : vector<16x24xf32>, vector<24x128xf32>, vector<16x128xf32> -> vector<16x128xf32>
    %c1_45 = arith.constant 1 : index
    %c0_46 = arith.constant 0 : index
    %c0_47 = arith.constant 0 : index
    %66 = vector.load %arg7[%c1_45, %c0_46, %c0_47] : memref<3x16x1xf32, #tpu.memory_space<vmem>>, vector<1x16x1xf32>
    %67 = vector.shape_cast %66 : vector<1x16x1xf32> to vector<16x1xf32>
    %68 = vector.broadcast %67 : vector<16x1xf32> to vector<16x128xf32>
    %69 = arith.addf %65, %68 : vector<16x128xf32>
    %70 = vector.extract_strided_slice %69 {offsets = [0, 0], sizes = [8, 128], strides = [1, 1]} : vector<16x128xf32> to vector<8x128xf32>
    %71 = math.tanh %70 : vector<8x128xf32>
    %72 = vector.extract_strided_slice %69 {offsets = [8, 0], sizes = [8, 128], strides = [1, 1]} : vector<16x128xf32> to vector<8x128xf32>
    %cst_48 = arith.constant 5.000000e-01 : f32
    %73 = vector.broadcast %cst_48 : f32 to vector<8x128xf32>
    %74 = arith.mulf %73, %72 : vector<8x128xf32>
    %75 = math.tanh %74 : vector<8x128xf32>
    %cst_49 = arith.constant 1.000000e+00 : f32
    %76 = vector.broadcast %cst_49 : f32 to vector<8x128xf32>
    %77 = arith.addf %76, %75 : vector<8x128xf32>
    %cst_50 = arith.constant 5.000000e-01 : f32
    %78 = vector.broadcast %cst_50 : f32 to vector<8x128xf32>
    %79 = arith.mulf %78, %77 : vector<8x128xf32>
    %80 = arith.mulf %71, %79 : vector<8x128xf32>
    %c1_51 = arith.constant 1 : index
    %c0_52 = arith.constant 0 : index
    %c0_53 = arith.constant 0 : index
    %81 = vector.load %arg8[%c1_51, %c0_52, %c0_53] : memref<3x8x8xf32, #tpu.memory_space<vmem>>, vector<1x8x8xf32>
    %82 = vector.shape_cast %81 : vector<1x8x8xf32> to vector<8x8xf32>
    %cst_54 = arith.constant dense<0.000000e+00> : vector<8x128xf32>
    %83 = tpu.matmul %82, %80, %cst_54 {dimension_numbers = #tpu.dot_dimension_numbers<[1], [0], [0], [1], [0, 0, 1, 1], [], []>} : vector<8x8xf32>, vector<8x128xf32>, vector<8x128xf32> -> vector<8x128xf32>
    %c1_55 = arith.constant 1 : index
    %c0_56 = arith.constant 0 : index
    %c0_57 = arith.constant 0 : index
    %84 = vector.load %arg9[%c1_55, %c0_56, %c0_57] : memref<3x8x1xf32, #tpu.memory_space<vmem>>, vector<1x8x1xf32>
    %85 = vector.shape_cast %84 : vector<1x8x1xf32> to vector<8x1xf32>
    %86 = vector.broadcast %85 : vector<8x1xf32> to vector<8x128xf32>
    %87 = arith.addf %83, %86 : vector<8x128xf32>
    %88 = arith.addf %48, %87 : vector<8x128xf32>
    %c4_i32 = arith.constant 4 : i32
    %89 = tpu.dynamic_rotate %87 by %c4_i32 dim 1 : vector<8x128xf32>, i32 -> vector<8x128xf32>
    %90 = vector.extract_strided_slice %8 {offsets = [4, 0, 0], sizes = [1, 1, 128], strides = [1, 1, 1]} : vector<6x1x128xf32> to vector<1x1x128xf32>
    %91 = vector.shape_cast %90 : vector<1x1x128xf32> to vector<1x128xf32>
    %92 = vector.broadcast %91 : vector<1x128xf32> to vector<8x128xf32>
    %93 = arith.mulf %89, %92 : vector<8x128xf32>
    %c124_i32 = arith.constant 124 : i32
    %94 = tpu.dynamic_rotate %87 by %c124_i32 dim 1 : vector<8x128xf32>, i32 -> vector<8x128xf32>
    %95 = vector.extract_strided_slice %8 {offsets = [5, 0, 0], sizes = [1, 1, 128], strides = [1, 1, 1]} : vector<6x1x128xf32> to vector<1x1x128xf32>
    %96 = vector.shape_cast %95 : vector<1x1x128xf32> to vector<1x128xf32>
    %97 = vector.broadcast %96 : vector<1x128xf32> to vector<8x128xf32>
    %98 = arith.mulf %94, %97 : vector<8x128xf32>
    %c0_58 = arith.constant 0 : index
    %c0_59 = arith.constant 0 : index
    %99 = vector.load %arg11[%c0_58, %c0_59] : memref<24x128xf32, #tpu.memory_space<vmem>>, vector<8x128xf32>
    tpu.vector_store %arg11[%c0_58, %c0_59], %93 {strides = array<i32>} : memref<24x128xf32, #tpu.memory_space<vmem>>, vector<8x128xf32>,
    %c8_60 = arith.constant 8 : index
    %c0_61 = arith.constant 0 : index
    %100 = vector.load %arg11[%c8_60, %c0_61] : memref<24x128xf32, #tpu.memory_space<vmem>>, vector<8x128xf32>
    tpu.vector_store %arg11[%c8_60, %c0_61], %87 {strides = array<i32>} : memref<24x128xf32, #tpu.memory_space<vmem>>, vector<8x128xf32>,
    %c16_62 = arith.constant 16 : index
    %c0_63 = arith.constant 0 : index
    %101 = vector.load %arg11[%c16_62, %c0_63] : memref<24x128xf32, #tpu.memory_space<vmem>>, vector<8x128xf32>
    tpu.vector_store %arg11[%c16_62, %c0_63], %98 {strides = array<i32>} : memref<24x128xf32, #tpu.memory_space<vmem>>, vector<8x128xf32>,
    %c2 = arith.constant 2 : index
    %c0_64 = arith.constant 0 : index
    %c0_65 = arith.constant 0 : index
    %102 = vector.load %arg6[%c2, %c0_64, %c0_65] : memref<3x16x24xf32, #tpu.memory_space<vmem>>, vector<1x16x24xf32>
    %103 = vector.shape_cast %102 : vector<1x16x24xf32> to vector<16x24xf32>
    %c0_66 = arith.constant 0 : index
    %c0_67 = arith.constant 0 : index
    %104 = vector.load %arg11[%c0_66, %c0_67] : memref<24x128xf32, #tpu.memory_space<vmem>>, vector<24x128xf32>
    %cst_68 = arith.constant dense<0.000000e+00> : vector<16x128xf32>
    %105 = tpu.matmul %103, %104, %cst_68 {dimension_numbers = #tpu.dot_dimension_numbers<[1], [0], [0], [1], [0, 0, 1, 1], [], []>} : vector<16x24xf32>, vector<24x128xf32>, vector<16x128xf32> -> vector<16x128xf32>
    %c2_69 = arith.constant 2 : index
    %c0_70 = arith.constant 0 : index
    %c0_71 = arith.constant 0 : index
    %106 = vector.load %arg7[%c2_69, %c0_70, %c0_71] : memref<3x16x1xf32, #tpu.memory_space<vmem>>, vector<1x16x1xf32>
    %107 = vector.shape_cast %106 : vector<1x16x1xf32> to vector<16x1xf32>
    %108 = vector.broadcast %107 : vector<16x1xf32> to vector<16x128xf32>
    %109 = arith.addf %105, %108 : vector<16x128xf32>
    %110 = vector.extract_strided_slice %109 {offsets = [0, 0], sizes = [8, 128], strides = [1, 1]} : vector<16x128xf32> to vector<8x128xf32>
    %111 = math.tanh %110 : vector<8x128xf32>
    %112 = vector.extract_strided_slice %109 {offsets = [8, 0], sizes = [8, 128], strides = [1, 1]} : vector<16x128xf32> to vector<8x128xf32>
    %cst_72 = arith.constant 5.000000e-01 : f32
    %113 = vector.broadcast %cst_72 : f32 to vector<8x128xf32>
    %114 = arith.mulf %113, %112 : vector<8x128xf32>
    %115 = math.tanh %114 : vector<8x128xf32>
    %cst_73 = arith.constant 1.000000e+00 : f32
    %116 = vector.broadcast %cst_73 : f32 to vector<8x128xf32>
    %117 = arith.addf %116, %115 : vector<8x128xf32>
    %cst_74 = arith.constant 5.000000e-01 : f32
    %118 = vector.broadcast %cst_74 : f32 to vector<8x128xf32>
    %119 = arith.mulf %118, %117 : vector<8x128xf32>
    %120 = arith.mulf %111, %119 : vector<8x128xf32>
    %c2_75 = arith.constant 2 : index
    %c0_76 = arith.constant 0 : index
    %c0_77 = arith.constant 0 : index
    %121 = vector.load %arg8[%c2_75, %c0_76, %c0_77] : memref<3x8x8xf32, #tpu.memory_space<vmem>>, vector<1x8x8xf32>
    %122 = vector.shape_cast %121 : vector<1x8x8xf32> to vector<8x8xf32>
    %cst_78 = arith.constant dense<0.000000e+00> : vector<8x128xf32>
    %123 = tpu.matmul %122, %120, %cst_78 {dimension_numbers = #tpu.dot_dimension_numbers<[1], [0], [0], [1], [0, 0, 1, 1], [], []>} : vector<8x8xf32>, vector<8x128xf32>, vector<8x128xf32> -> vector<8x128xf32>
    %c2_79 = arith.constant 2 : index
    %c0_80 = arith.constant 0 : index
    %c0_81 = arith.constant 0 : index
    %124 = vector.load %arg9[%c2_79, %c0_80, %c0_81] : memref<3x8x1xf32, #tpu.memory_space<vmem>>, vector<1x8x1xf32>
    %125 = vector.shape_cast %124 : vector<1x8x1xf32> to vector<8x1xf32>
    %126 = vector.broadcast %125 : vector<8x1xf32> to vector<8x128xf32>
    %127 = arith.addf %123, %126 : vector<8x128xf32>
    %128 = arith.addf %88, %127 : vector<8x128xf32>
    %c0_82 = arith.constant 0 : index
    %c0_83 = arith.constant 0 : index
    %c0_84 = arith.constant 0 : index
    %c0_85 = arith.constant 0 : index
    %129 = vector.load %arg10[%c0_82, %c0_83, %c0_84, %c0_85] : memref<1x1x8x128xf32, #tpu.memory_space<vmem>>, vector<1x1x8x128xf32>
    %130 = vector.shape_cast %129 : vector<1x1x8x128xf32> to vector<8x128xf32>
    %131 = vector.shape_cast %128 : vector<8x128xf32> to vector<1x1x8x128xf32>
    tpu.vector_store %arg10[%c0_82, %c0_83, %c0_84, %c0_85], %131 {strides = array<i32>} : memref<1x1x8x128xf32, #tpu.memory_space<vmem>>, vector<1x1x8x128xf32>,
    return
  }
  func.func @transform_0(%arg0: i32, %arg1: i32) -> (i32, i32, i32, i32) {
    %c0_i32 = arith.constant 0 : i32
    %c0_i32_0 = arith.constant 0 : i32
    %c0_i32_1 = arith.constant 0 : i32
    return %arg0, %arg1, %c0_i32, %c0_i32_0 : i32, i32, i32, i32
  }
  func.func @transform_1(%arg0: i32, %arg1: i32) -> (i32, i32, i32, i32) {
    %c0_i32 = arith.constant 0 : i32
    %c0_i32_0 = arith.constant 0 : i32
    %c0_i32_1 = arith.constant 0 : i32
    %c0_i32_2 = arith.constant 0 : i32
    return %arg1, %c0_i32, %c0_i32_0, %c0_i32_1 : i32, i32, i32, i32
  }
  func.func @transform_2(%arg0: i32, %arg1: i32) -> (i32, i32) {
    %c0_i32 = arith.constant 0 : i32
    %c0_i32_0 = arith.constant 0 : i32
    %c0_i32_1 = arith.constant 0 : i32
    return %c0_i32, %c0_i32_0 : i32, i32
  }
  func.func @transform_3(%arg0: i32, %arg1: i32) -> (i32, i32) {
    %c0_i32 = arith.constant 0 : i32
    %c0_i32_0 = arith.constant 0 : i32
    %c0_i32_1 = arith.constant 0 : i32
    return %c0_i32, %c0_i32_0 : i32, i32
  }
  func.func @transform_4(%arg0: i32, %arg1: i32) -> (i32, i32, i32) {
    %c0_i32 = arith.constant 0 : i32
    %c0_i32_0 = arith.constant 0 : i32
    %c0_i32_1 = arith.constant 0 : i32
    %c0_i32_2 = arith.constant 0 : i32
    return %c0_i32, %c0_i32_0, %c0_i32_1 : i32, i32, i32
  }
  func.func @transform_5(%arg0: i32, %arg1: i32) -> (i32, i32, i32) {
    %c0_i32 = arith.constant 0 : i32
    %c0_i32_0 = arith.constant 0 : i32
    %c0_i32_1 = arith.constant 0 : i32
    %c0_i32_2 = arith.constant 0 : i32
    return %c0_i32, %c0_i32_0, %c0_i32_1 : i32, i32, i32
  }
  func.func @transform_6(%arg0: i32, %arg1: i32) -> (i32, i32, i32) {
    %c0_i32 = arith.constant 0 : i32
    %c0_i32_0 = arith.constant 0 : i32
    %c0_i32_1 = arith.constant 0 : i32
    %c0_i32_2 = arith.constant 0 : i32
    return %c0_i32, %c0_i32_0, %c0_i32_1 : i32, i32, i32
  }
  func.func @transform_7(%arg0: i32, %arg1: i32) -> (i32, i32, i32) {
    %c0_i32 = arith.constant 0 : i32
    %c0_i32_0 = arith.constant 0 : i32
    %c0_i32_1 = arith.constant 0 : i32
    %c0_i32_2 = arith.constant 0 : i32
    return %c0_i32, %c0_i32_0, %c0_i32_1 : i32, i32, i32
  }
  func.func @transform_8(%arg0: i32, %arg1: i32) -> (i32, i32, i32, i32) {
    %c0_i32 = arith.constant 0 : i32
    %c0_i32_0 = arith.constant 0 : i32
    %c0_i32_1 = arith.constant 0 : i32
    return %arg0, %arg1, %c0_i32, %c0_i32_0 : i32, i32, i32, i32
  }
}

</mosaic_0001>

<bundles_post_ra>
// kernel: tpu_custom_call.1
= control target key start
LH: loop header
LB: loop body
LE: loop exit
PB: predicated region body
PF: predicated region fallthrough
CT: control target
= control target key end

     0   :  { %vm42_vm0 = vcmask 1043456   ;;  %vm38_vm1 = vcmask 31744   ;;  %v471_v2 = vmov 0   ;;  %s629_s0 = inlined_call_operand.vmem [shape: f32[1,1,4,128], index: 0, kind: input, shape index: {}]   ;;  %s630_s1 = inlined_call_operand.vmem [shape: f32[1,6,1,128], index: 1, kind: input, shape index: {}]   ;;  %s631_s2 = inlined_call_operand.vmem [shape: f32[8,4], index: 2, kind: input, shape index: {}]   ;;  %s632_s3 = inlined_call_operand.vmem [shape: f32[8,1], index: 3, kind: input, shape index: {}]   ;;  %s633_s4 = inlined_call_operand.vmem [shape: f32[3,16,24], index: 4, kind: input, shape index: {}]   ;;  %s634_s5 = inlined_call_operand.vmem [shape: f32[3,16,1], index: 5, kind: input, shape index: {}]   ;;  %s635_s6 = inlined_call_operand.vmem [shape: f32[3,8,8], index: 6, kind: input, shape index: {}]   ;;  %s636_s7 = inlined_call_operand.vmem [shape: f32[3,8,1], index: 7, kind: input, shape index: {}]   ;;  %s637_s8 = inlined_call_operand.hbm [shape: f32[1,1,8,128], index: 8, kind: output, shape index: {}]  }
   0x1   :  { %v30_v0 = vld [vmem:[%s629_s0] sm:$0xf]  ;;  %424 = vset.pattern.permute.xlu0 %v471_v2  ;;  %425 = vset.pattern.permute.xlu1 %v471_v2 }
   0x2   :  { %v31_v1 = vld [vmem:[%s631_s2] sm:$0xff]  ;;  %393 = vmatpush.msk.msra.mxu0 %vm42_vm0, %v30_v0  ;;  %426 = vset.pattern.permute.xlu2 %v471_v2 }
   0x3   :  { %v32_v3 = vld [vmem:[%s632_s3] sm:$0xff]  ;;  %394 = vmatmul.msk.f32.vlgmr.msra.gmra.mxu0 %vm38_vm1, %v31_v1 }
   0x4   :  { %35 = vperm.xlu0 %424, %v32_v3  }
   0x5   :  { %13 = vsyncpa [#allocation4], 0  ;;  %s472_s0 = smov 1   ;;  %s473_s2 = smov 127   ;;  %v93_v7 = vld [vmem:[%s634_s5 + $0x8] sm:$0xff]  ;;  %v92_v8 = vld [vmem:[%s634_s5] sm:$0xff] }
   0x6   :  { %96 = vperm.xlu2 %426, %v92_v8   ;;  %v141_v9 = vld [vmem:[%s636_s7] sm:$0xff]  ;;  %v401_v11 = vld [vmem:[%s634_s5 + $0x18] sm:$0xff]  ;;  %vm104_vm2 = vcmask 195584   ;;  %v88_v18 = vld [vmem:[%s633_s4 + $0x8] sm:$0xff]  ;;  %vm147_vm3 = vcmask 64512   ;;  %s474_s28 = smov 2  }
   0x7   :  { %v428_v10 = vld [vmem:[%s630_s1 + $0x1] ss:$0 sm:$0xff]  ;;  %v427_v13 = vld [vmem:[%s630_s1] ss:$0 sm:$0xff]  ;;  %s475_s29 = smov 126   ;;  %v405_v35 = vld [vmem:[%s636_s7 + $0x8] sm:$0xff] }
   0x8   :  { %v87_v17 = vld [vmem:[%s633_s4] sm:$0xff]  ;;  %v400_v36 = vld [vmem:[%s634_s5 + $0x10] sm:$0xff]  ;;  %v410_v37 = vld [vmem:[%s634_s5 + $0x28] sm:$0xff]  ;;  %s476_s21 = smov 4   ;;  %s477_s22 = smov 124  }
   0x9   :  { %v140_v31 = vld [vmem:[%s635_s6] sm:$0xff]  ;;  %v398_v44 = vld [vmem:[%s633_s4 + $0x10] sm:$0xff]  ;;  %v399_v45 = vld [vmem:[%s633_s4 + $0x18] sm:$0xff]  ;;  %s384_s3 = sshll.u32 %s637_s8, 4  ;;  %s385_s3 = int_to_ptr.hbm [resolvable:$true] %s384_s3 }
   0xa   :  { %v430_v38 = vld [vmem:[%s630_s1 + $0x3] ss:$0 sm:$0xff]  ;;  %v429_v40 = vld [vmem:[%s630_s1 + $0x2] ss:$0 sm:$0xff]  ;;  %v404_v58 = vld [vmem:[%s635_s6 + $0x8] sm:$0xff] }
   0xb   :  { %v414_v62 = vld [vmem:[%s636_s7 + $0x10] sm:$0xff]  ;;  %v409_v63 = vld [vmem:[%s634_s5 + $0x20] sm:$0xff]  ;;  %v408_v8 = vld [vmem:[%s633_s4 + $0x28] sm:$0xff] }
   0xc   :  { %v431_v0 = vld [vmem:[%s630_s1 + $0x5] ss:$0 sm:$0xff]  ;;  %v432_v3 = vld [vmem:[%s630_s1 + $0x4] ss:$0 sm:$0xff] }
   0xe   :  { %144 = vperm.xlu2 %426, %v141_v9  }
  0x16   :  { %203 = vperm.xlu2 %426, %v401_v11  }
  0x60   :  { %v97_v24 = vpop.permute.xlu2 %96 }
  0x68   :  { %v145_v32 = vpop.permute.xlu2 %144 }
  0x70   :  { %v204_v47 = vpop.permute.xlu2 %203 }
  0x76   :  { %v36_v4 = vpop.permute.xlu0 %35 }
  0x80   :  { %v63_v5 = vpop.f32.mrf.mxu0 }
  0x81   :  { %v533_v6 = vadd.f32 %v63_v5, %v36_v4 }
  0x83   :  { %72 = vrot.lane.b32.xlu1 %v533_v6, %s472_s0  ;;  %78 = vrot.lane.b32.xlu0 %v533_v6, %s473_s2 }
  0x8b   :  { %101 = vperm.xlu1 %425, %v93_v7   ;;  %v407_v7 = vld [vmem:[%s633_s4 + $0x20] sm:$0xff]  ;;  %s478_s4 = smov [#allocation3]  }
  0x8c   :  { %s382_s2 = sshll.u32 %s478_s4, 4  ;;  %s383_s2 = int_to_ptr.vmem [resolvable:$true] %s382_s2 }
  0xf5   :  { %v79_v12 = vpop.permute.xlu0 %78  ;;  %v73_v15 = vpop.permute.xlu1 %72 }
  0xf6   :  { %v83_v14 = vmul.f32 %v428_v10, %v79_v12  ;;  %v77_v16 = vmul.f32 %v427_v13, %v73_v15 }
  0xf8   :  { %124 = vmatpush.msra.mxu1 %v83_v14 }
  0xfa   :  { %125 = vmatpush.msra.mxu1 %v533_v6 }
  0xfc   :  { %126 = vmatpush.msra.mxu1 %v77_v16 }
  0xfd   :  { %395 = vmatmul.msk.f32.vlgmr.msra.gmra.mxu1 %vm104_vm2, %v87_v17  ;;  %v102_v20 = vpop.permute.xlu1 %101 }
 0x105   :  { %396 = vmatmul.msk.f32.gmra.mxu1 %vm104_vm2, %v88_v18 }
 0x17a   :  { %v128_v19 = vpop.f32.mrf.mxu1 }
 0x17b   :  { %v129_v25 = vadd.f32 %v128_v19, %v97_v24 }
 0x182   :  { %v131_v21 = vpop.f32.mrf.mxu1 }
 0x183   :  { %v132_v22 = vadd.f32 %v131_v21, %v102_v20  ;;  %v413_v21 = vld [vmem:[%s635_s6 + $0x10] sm:$0xff] }
 0x185   :  { %v135_v23 = vmul.f32 0.5, %v132_v22 }
 0x187   :  { %433 = vtanh.f32 %v135_v23 }
 0x188   :  { %435 = vtanh.f32 %v129_v25 }
 0x18d   :  { %v434_v26 = vpop.eup %433 }
 0x18e   :  { %v137_v27 = vadd.f32 1.0, %v434_v26  ;;  %v436_v29 = vpop.eup %435 }
 0x190   :  { %v138_v28 = vmul.f32 0.5, %v137_v27 }
 0x192   :  { %v139_v30 = vmul.f32 %v436_v29, %v138_v28 }
 0x194   :  { %166 = vmatpush.msra.mxu2 %v139_v30 }
 0x195   :  { %397 = vmatmul.msk.f32.vlgmr.msra.gmra.mxu2 %vm147_vm3, %v140_v31 }
 0x218   :  { %v168_v33 = vpop.f32.mrf.mxu2 }
 0x219   :  { %v568_v34 = vadd.f32 %v168_v33, %v145_v32 }
 0x21b   :  { %172 = vrot.lane.b32.xlu1 %v568_v34, %s474_s28  ;;  %178 = vrot.lane.b32.xlu0 %v568_v34, %s475_s29  ;;  %v171_v22 = vadd.f32 %v568_v34, %v533_v6 }
 0x223   :  { %247 = vperm.xlu1 %425, %v405_v35   ;;  %198 = vperm.xlu0 %424, %v400_v36  }
 0x22b   :  { %305 = vperm.xlu1 %425, %v410_v37  }
 0x28d   :  { %v179_v39 = vpop.permute.xlu0 %178  ;;  %v173_v42 = vpop.permute.xlu1 %172 }
 0x28e   :  { %v183_v41 = vmul.f32 %v430_v38, %v179_v39  ;;  %v177_v43 = vmul.f32 %v429_v40, %v173_v42 }
 0x290   :  { %225 = vmatpush.msra.mxu3 %v183_v41 }
 0x292   :  { %226 = vmatpush.msra.mxu3 %v568_v34 }
 0x294   :  { %227 = vmatpush.msra.mxu3 %v177_v43 }
 0x295   :  { %402 = vmatmul.msk.f32.vlgmr.msra.gmra.mxu3 %vm104_vm2, %v398_v44  ;;  %v199_v51 = vpop.permute.xlu0 %198  ;;  %v248_v59 = vpop.permute.xlu1 %247 }
 0x29d   :  { %403 = vmatmul.msk.f32.gmra.mxu3 %vm104_vm2, %v399_v45  ;;  %v306_v10 = vpop.permute.xlu1 %305 }
 0x318   :  { %v229_v46 = vpop.f32.mrf.mxu3 }
 0x319   :  { %v230_v52 = vadd.f32 %v229_v46, %v199_v51 }
 0x320   :  { %v232_v48 = vpop.f32.mrf.mxu3 }
 0x321   :  { %v233_v49 = vadd.f32 %v232_v48, %v204_v47 }
 0x323   :  { %v236_v50 = vmul.f32 0.5, %v233_v49 }
 0x325   :  { %437 = vtanh.f32 %v236_v50 }
 0x326   :  { %439 = vtanh.f32 %v230_v52 }
 0x32b   :  { %v438_v53 = vpop.eup %437 }
 0x32c   :  { %v238_v54 = vadd.f32 1.0, %v438_v53  ;;  %v440_v56 = vpop.eup %439 }
 0x32e   :  { %v239_v55 = vmul.f32 0.5, %v238_v54 }
 0x330   :  { %v240_v57 = vmul.f32 %v440_v56, %v239_v55 }
 0x332   :  { %268 = vmatpush.msrb.mxu0 %v240_v57 }
 0x333   :  { %406 = vmatmul.msk.f32.vlgmr.msrb.gmra.mxu0 %vm147_vm3, %v404_v58 }
 0x3b0   :  { %v270_v60 = vpop.f32.mrf.mxu0 }
 0x3b1   :  { %v271_v61 = vadd.f32 %v270_v60, %v248_v59 }
 0x3b3   :  { %274 = vrot.lane.b32.xlu0 %v271_v61, %s476_s21  ;;  %280 = vrot.lane.b32.xlu2 %v271_v61, %s477_s22  ;;  %v273_v25 = vadd.f32 %v271_v61, %v171_v22 }
 0x3bb   :  { %349 = vperm.xlu0 %424, %v414_v62   ;;  %300 = vperm.xlu2 %426, %v409_v63  }
 0x40d   :  { %v281_v1 = vpop.permute.xlu2 %280 }
 0x40e   :  { %v285_v2 = vmul.f32 %v431_v0, %v281_v1 }
 0x410   :  { %327 = vmatpush.msrb.mxu2 %v285_v2 }
 0x412   :  { %328 = vmatpush.msrb.mxu2 %v271_v61 }
 0x415   :  { %v301_v14 = vpop.permute.xlu2 %300 }
 0x425   :  { %v275_v4 = vpop.permute.xlu0 %274 }
 0x426   :  { %v279_v5 = vmul.f32 %v432_v3, %v275_v4 }
 0x428   :  { %329 = vmatpush.msrb.mxu2 %v279_v5 }
 0x429   :  { %411 = vmatmul.msk.f32.vlgmr.msrb.gmra.mxu2 %vm104_vm2, %v407_v7 }
 0x42d   :  { %v350_v23 = vpop.permute.xlu0 %349 }
 0x431   :  { %412 = vmatmul.msk.f32.gmra.mxu2 %vm104_vm2, %v408_v8 }
 0x4ac   :  { %v331_v9 = vpop.f32.mrf.mxu2 }
 0x4ad   :  { %v332_v15 = vadd.f32 %v331_v9, %v301_v14 }
 0x4b4   :  { %v334_v11 = vpop.f32.mrf.mxu2 }
 0x4b5   :  { %v335_v12 = vadd.f32 %v334_v11, %v306_v10 }
 0x4b7   :  { %v338_v13 = vmul.f32 0.5, %v335_v12 }
 0x4b9   :  { %441 = vtanh.f32 %v338_v13 }
 0x4ba   :  { %443 = vtanh.f32 %v332_v15 }
 0x4bf   :  { %v442_v16 = vpop.eup %441 }
 0x4c0   :  { %v340_v17 = vadd.f32 1.0, %v442_v16  ;;  %v444_v19 = vpop.eup %443 }
 0x4c2   :  { %v341_v18 = vmul.f32 0.5, %v340_v17 }
 0x4c4   :  { %v342_v20 = vmul.f32 %v444_v19, %v341_v18 }
 0x4c6   :  { %370 = vmatpush.msra.mxu0 %v342_v20 }
 0x4c7   :  { %415 = vmatmul.msk.f32.vlgmr.msra.gmra.mxu0 %vm147_vm3, %v413_v21 }
 0x544   :  { %v372_v24 = vpop.f32.mrf.mxu0 }
 0x545   :  { %v373_v26 = vadd.f32 %v372_v24, %v350_v23 }
 0x547   :  { %v375_v27 = vadd.f32 %v373_v26, %v273_v25 }
 0x549   :  { %376 = vst [vmem:[#allocation3] sm:$0xff] %v375_v27 }
 0x54a   :  { %387 = dma.vmem_to_hbm [thread:$0]  %s383_s2, 128, %s385_s3, [#allocation4]  }
 0x54b   :  { %469 = dma.done.wait [#allocation4], 128  }
 0x54c   :  { %470 = vsyncadd [#allocation4], 4294967168 }
 0x54d   :  { %392 = vsyncpa [#allocation4], 1 }

</bundles_post_ra>
